<compile_context>
chip_gen: v6e
topology: v6e:2x2x1
jax: 0.10.0
libtpu: 0.0.40
codegen_flags: <defaults>
</compile_context>

<pallas_src>
import functools

import jax
import jax.numpy as jnp
from jax.experimental import pallas as pl
from jax.experimental.pallas import tpu as pltpu


def _ahi_mlp_kernel(x_ref, w1_ref, b1_ref, w2_ref, b2_ref, o_ref):
    # x_ref:  (6, TB)  VMEM, f32, batch on the 128-lane axis
    # w1_ref: (6, 12)  SMEM   b1_ref: (12,) SMEM
    # w2_ref: (12,)    SMEM   b2_ref: (1,)  SMEM
    # o_ref:  (1, TB)  VMEM
    x = x_ref[...]                       # (6, TB)
    tb = x.shape[1]
    in_f, hid = w1_ref.shape             # 6, 12 (static)

    # Layer 2 accumulator, initialized with its bias.
    y = jnp.full((1, tb), b2_ref[0], dtype=jnp.float32)

    # Fully unrolled VPU broadcast-FMA MLP (no MXU, no cross-lane reduce).
    for j in range(hid):
        h_j = jnp.full((1, tb), b1_ref[j], dtype=jnp.float32)
        for k in range(in_f):
            h_j = h_j + w1_ref[k, j] * x[k : k + 1, :]
        y = y + w2_ref[j] * jnp.maximum(h_j, 0.0)   # ReLU fused into layer 2

    o_ref[...] = y.astype(o_ref.dtype)


@functools.partial(jax.jit, static_argnames=("tb",))
def ahi_correction_forward(x, w1, b1, w2, b2, *, tb=1024):
    """Forward pass of AHICorrectionModel.

    x:  (B, 6) float32
    w1: (6, 12), b1: (12,), w2: (12, 1), b2: (1,)   (weights in (in, out) layout)
    Returns (B, 1) float32.
    """
    B = x.shape[0]

    # Batch tile: multiple of 128 (lane-dense), no larger than the padded batch.
    tb = max(128, min(tb, pl.cdiv(B, 128) * 128))
    n_blocks = pl.cdiv(B, tb)
    Bp = n_blocks * tb

    # Feature-major: batch on the lane axis; zero-pad batch to a tile multiple.
    xt = x.T                                        # (6, B)
    if Bp != B:
        xt = jnp.pad(xt, ((0, 0), (0, Bp - B)))     # (6, Bp)

    smem = pl.BlockSpec(memory_space=pltpu.MemorySpace.SMEM)

    out = pl.pallas_call(
        _ahi_mlp_kernel,
        out_shape=jax.ShapeDtypeStruct((1, Bp), jnp.float32),
        grid=(n_blocks,),
        in_specs=[
            pl.BlockSpec((6, tb), lambda i: (0, i)),   # x tile, batch on lanes
            smem,                                      # w1 (6, 12) resident
            smem,                                      # b1 (12,)
            smem,                                      # w2 (12,)
            smem,                                      # b2 (1,)
        ],
        out_specs=pl.BlockSpec((1, tb), lambda i: (0, i)),  # lane-dense output
        compiler_params=pltpu.CompilerParams(
            dimension_semantics=("parallel",),
        ),
    )(xt, w1, b1, w2.reshape(-1), b2)

    return out[0, :B].reshape(B, 1)


def init_params(key):
    """Deterministic init mimicking nn.Linear's uniform(-1/sqrt(fan_in), ...)."""
    k1, k2, k3, k4 = jax.random.split(key, 4)
    lim1 = 1.0 / jnp.sqrt(6.0)
    lim2 = 1.0 / jnp.sqrt(12.0)
    # stored as (in_features, out_features) == PyTorch weight.T
    w1 = jax.random.uniform(k1, (6, 12), jnp.float32, -lim1, lim1)
    b1 = jax.random.uniform(k2, (12,), jnp.float32, -lim1, lim1)
    w2 = jax.random.uniform(k3, (12, 1), jnp.float32, -lim2, lim2)
    b2 = jax.random.uniform(k4, (1,), jnp.float32, -lim2, lim2)
    return w1, b1, w2, b2


def reference_forward(x, w1, b1, w2, b2):
    h = jnp.maximum(x @ w1 + b1, 0.0)
    return h @ w2 + b2


if __name__ == "__main__":
    key = jax.random.PRNGKey(0)
    kx, kx2, kp = jax.random.split(key, 3)
    w1, b1, w2, b2 = init_params(kp)

    # Small batch (single grid step).
    B1 = 8
    x1 = jax.random.normal(kx, (B1, 6), jnp.float32)
    out1 = jax.block_until_ready(ahi_correction_forward(x1, w1, b1, w2, b2, tb=128))
    ref1 = reference_forward(x1, w1, b1, w2, b2)
    assert out1.shape == (B1, 1), out1.shape
    assert jnp.allclose(out1, ref1, atol=1e-5, rtol=1e-5)

    # Batch not divisible by the tile -> exercises the multi-step grid + padding.
    B2 = 300
    x2 = jax.random.normal(kx2, (B2, 6), jnp.float32)
    out2 = jax.block_until_ready(ahi_correction_forward(x2, w1, b1, w2, b2, tb=128))
    ref2 = reference_forward(x2, w1, b1, w2, b2)
    assert out2.shape == (B2, 1), out2.shape
    assert jnp.allclose(out2, ref2, atol=1e-5, rtol=1e-5)

    print("KERNEL_OK")
</pallas_src>

<mosaic_0001>
module attributes {stable_mosaic.version = 11 : i64} {
  func.func @_ahi_mlp_kernel(%arg0: i32, %arg1: memref<6x128xf32, #tpu.memory_space<vmem>>, %arg2: memref<6x12xf32, #tpu.memory_space<smem>>, %arg3: memref<12xf32, #tpu.memory_space<smem>>, %arg4: memref<12xf32, #tpu.memory_space<smem>>, %arg5: memref<1xf32, #tpu.memory_space<smem>>, %arg6: memref<1x128xf32, #tpu.memory_space<vmem>>) attributes {dimension_semantics = [#tpu.dimension_semantics<parallel>], iteration_bounds = array<i64: 1>, scalar_prefetch = 0 : i64, scratch_operands = 0 : i64, tpu.core_type = #tpu.core_type<tc>, window_params = [{transform_indices = @transform_0, window_bounds = array<i64: 6, 128>}, {transform_indices = @transform_1, window_bounds = array<i64: 6, 12>}, {transform_indices = @transform_2, window_bounds = array<i64: 12>}, {transform_indices = @transform_3, window_bounds = array<i64: 12>}, {transform_indices = @transform_4, window_bounds = array<i64: 1>}, {transform_indices = @transform_5, window_bounds = array<i64: 1, 128>}]} {
    %c0 = arith.constant 0 : index
    %c0_0 = arith.constant 0 : index
    %0 = vector.load %arg1[%c0, %c0_0] : memref<6x128xf32, #tpu.memory_space<vmem>>, vector<6x128xf32>
    %c0_1 = arith.constant 0 : index
    %1 = memref.load %arg5[%c0_1] : memref<1xf32, #tpu.memory_space<smem>>
    %2 = vector.broadcast %1 : f32 to vector<1x128xf32>
    %c0_2 = arith.constant 0 : index
    %3 = memref.load %arg3[%c0_2] : memref<12xf32, #tpu.memory_space<smem>>
    %4 = vector.broadcast %3 : f32 to vector<1x128xf32>
    %c0_3 = arith.constant 0 : index
    %c0_4 = arith.constant 0 : index
    %5 = memref.load %arg2[%c0_3, %c0_4] : memref<6x12xf32, #tpu.memory_space<smem>>
    %6 = vector.extract_strided_slice %0 {offsets = [0, 0], sizes = [1, 128], strides = [1, 1]} : vector<6x128xf32> to vector<1x128xf32>
    %7 = vector.broadcast %5 : f32 to vector<1x128xf32>
    %8 = arith.mulf %7, %6 : vector<1x128xf32>
    %9 = arith.addf %4, %8 : vector<1x128xf32>
    %c1 = arith.constant 1 : index
    %c0_5 = arith.constant 0 : index
    %10 = memref.load %arg2[%c1, %c0_5] : memref<6x12xf32, #tpu.memory_space<smem>>
    %11 = vector.extract_strided_slice %0 {offsets = [1, 0], sizes = [1, 128], strides = [1, 1]} : vector<6x128xf32> to vector<1x128xf32>
    %12 = vector.broadcast %10 : f32 to vector<1x128xf32>
    %13 = arith.mulf %12, %11 : vector<1x128xf32>
    %14 = arith.addf %9, %13 : vector<1x128xf32>
    %c2 = arith.constant 2 : index
    %c0_6 = arith.constant 0 : index
    %15 = memref.load %arg2[%c2, %c0_6] : memref<6x12xf32, #tpu.memory_space<smem>>
    %16 = vector.extract_strided_slice %0 {offsets = [2, 0], sizes = [1, 128], strides = [1, 1]} : vector<6x128xf32> to vector<1x128xf32>
    %17 = vector.broadcast %15 : f32 to vector<1x128xf32>
    %18 = arith.mulf %17, %16 : vector<1x128xf32>
    %19 = arith.addf %14, %18 : vector<1x128xf32>
    %c3 = arith.constant 3 : index
    %c0_7 = arith.constant 0 : index
    %20 = memref.load %arg2[%c3, %c0_7] : memref<6x12xf32, #tpu.memory_space<smem>>
    %21 = vector.extract_strided_slice %0 {offsets = [3, 0], sizes = [1, 128], strides = [1, 1]} : vector<6x128xf32> to vector<1x128xf32>
    %22 = vector.broadcast %20 : f32 to vector<1x128xf32>
    %23 = arith.mulf %22, %21 : vector<1x128xf32>
    %24 = arith.addf %19, %23 : vector<1x128xf32>
    %c4 = arith.constant 4 : index
    %c0_8 = arith.constant 0 : index
    %25 = memref.load %arg2[%c4, %c0_8] : memref<6x12xf32, #tpu.memory_space<smem>>
    %26 = vector.extract_strided_slice %0 {offsets = [4, 0], sizes = [1, 128], strides = [1, 1]} : vector<6x128xf32> to vector<1x128xf32>
    %27 = vector.broadcast %25 : f32 to vector<1x128xf32>
    %28 = arith.mulf %27, %26 : vector<1x128xf32>
    %29 = arith.addf %24, %28 : vector<1x128xf32>
    %c5 = arith.constant 5 : index
    %c0_9 = arith.constant 0 : index
    %30 = memref.load %arg2[%c5, %c0_9] : memref<6x12xf32, #tpu.memory_space<smem>>
    %31 = vector.extract_strided_slice %0 {offsets = [5, 0], sizes = [1, 128], strides = [1, 1]} : vector<6x128xf32> to vector<1x128xf32>
    %32 = vector.broadcast %30 : f32 to vector<1x128xf32>
    %33 = arith.mulf %32, %31 : vector<1x128xf32>
    %34 = arith.addf %29, %33 : vector<1x128xf32>
    %c0_10 = arith.constant 0 : index
    %35 = memref.load %arg4[%c0_10] : memref<12xf32, #tpu.memory_space<smem>>
    %cst = arith.constant 0.000000e+00 : f32
    %36 = vector.broadcast %cst : f32 to vector<1x128xf32>
    %37 = arith.maximumf %34, %36 : vector<1x128xf32>
    %38 = vector.broadcast %35 : f32 to vector<1x128xf32>
    %39 = arith.mulf %38, %37 : vector<1x128xf32>
    %40 = arith.addf %2, %39 : vector<1x128xf32>
    %c1_11 = arith.constant 1 : index
    %41 = memref.load %arg3[%c1_11] : memref<12xf32, #tpu.memory_space<smem>>
    %42 = vector.broadcast %41 : f32 to vector<1x128xf32>
    %c0_12 = arith.constant 0 : index
    %c1_13 = arith.constant 1 : index
    %43 = memref.load %arg2[%c0_12, %c1_13] : memref<6x12xf32, #tpu.memory_space<smem>>
    %44 = vector.extract_strided_slice %0 {offsets = [0, 0], sizes = [1, 128], strides = [1, 1]} : vector<6x128xf32> to vector<1x128xf32>
    %45 = vector.broadcast %43 : f32 to vector<1x128xf32>
    %46 = arith.mulf %45, %44 : vector<1x128xf32>
    %47 = arith.addf %42, %46 : vector<1x128xf32>
    %c1_14 = arith.constant 1 : index
    %c1_15 = arith.constant 1 : index
    %48 = memref.load %arg2[%c1_14, %c1_15] : memref<6x12xf32, #tpu.memory_space<smem>>
    %49 = vector.extract_strided_slice %0 {offsets = [1, 0], sizes = [1, 128], strides = [1, 1]} : vector<6x128xf32> to vector<1x128xf32>
    %50 = vector.broadcast %48 : f32 to vector<1x128xf32>
    %51 = arith.mulf %50, %49 : vector<1x128xf32>
    %52 = arith.addf %47, %51 : vector<1x128xf32>
    %c2_16 = arith.constant 2 : index
    %c1_17 = arith.constant 1 : index
    %53 = memref.load %arg2[%c2_16, %c1_17] : memref<6x12xf32, #tpu.memory_space<smem>>
    %54 = vector.extract_strided_slice %0 {offsets = [2, 0], sizes = [1, 128], strides = [1, 1]} : vector<6x128xf32> to vector<1x128xf32>
    %55 = vector.broadcast %53 : f32 to vector<1x128xf32>
    %56 = arith.mulf %55, %54 : vector<1x128xf32>
    %57 = arith.addf %52, %56 : vector<1x128xf32>
    %c3_18 = arith.constant 3 : index
    %c1_19 = arith.constant 1 : index
    %58 = memref.load %arg2[%c3_18, %c1_19] : memref<6x12xf32, #tpu.memory_space<smem>>
    %59 = vector.extract_strided_slice %0 {offsets = [3, 0], sizes = [1, 128], strides = [1, 1]} : vector<6x128xf32> to vector<1x128xf32>
    %60 = vector.broadcast %58 : f32 to vector<1x128xf32>
    %61 = arith.mulf %60, %59 : vector<1x128xf32>
    %62 = arith.addf %57, %61 : vector<1x128xf32>
    %c4_20 = arith.constant 4 : index
    %c1_21 = arith.constant 1 : index
    %63 = memref.load %arg2[%c4_20, %c1_21] : memref<6x12xf32, #tpu.memory_space<smem>>
    %64 = vector.extract_strided_slice %0 {offsets = [4, 0], sizes = [1, 128], strides = [1, 1]} : vector<6x128xf32> to vector<1x128xf32>
    %65 = vector.broadcast %63 : f32 to vector<1x128xf32>
    %66 = arith.mulf %65, %64 : vector<1x128xf32>
    %67 = arith.addf %62, %66 : vector<1x128xf32>
    %c5_22 = arith.constant 5 : index
    %c1_23 = arith.constant 1 : index
    %68 = memref.load %arg2[%c5_22, %c1_23] : memref<6x12xf32, #tpu.memory_space<smem>>
    %69 = vector.extract_strided_slice %0 {offsets = [5, 0], sizes = [1, 128], strides = [1, 1]} : vector<6x128xf32> to vector<1x128xf32>
    %70 = vector.broadcast %68 : f32 to vector<1x128xf32>
    %71 = arith.mulf %70, %69 : vector<1x128xf32>
    %72 = arith.addf %67, %71 : vector<1x128xf32>
    %c1_24 = arith.constant 1 : index
    %73 = memref.load %arg4[%c1_24] : memref<12xf32, #tpu.memory_space<smem>>
    %cst_25 = arith.constant 0.000000e+00 : f32
    %74 = vector.broadcast %cst_25 : f32 to vector<1x128xf32>
    %75 = arith.maximumf %72, %74 : vector<1x128xf32>
    %76 = vector.broadcast %73 : f32 to vector<1x128xf32>
    %77 = arith.mulf %76, %75 : vector<1x128xf32>
    %78 = arith.addf %40, %77 : vector<1x128xf32>
    %c2_26 = arith.constant 2 : index
    %79 = memref.load %arg3[%c2_26] : memref<12xf32, #tpu.memory_space<smem>>
    %80 = vector.broadcast %79 : f32 to vector<1x128xf32>
    %c0_27 = arith.constant 0 : index
    %c2_28 = arith.constant 2 : index
    %81 = memref.load %arg2[%c0_27, %c2_28] : memref<6x12xf32, #tpu.memory_space<smem>>
    %82 = vector.extract_strided_slice %0 {offsets = [0, 0], sizes = [1, 128], strides = [1, 1]} : vector<6x128xf32> to vector<1x128xf32>
    %83 = vector.broadcast %81 : f32 to vector<1x128xf32>
    %84 = arith.mulf %83, %82 : vector<1x128xf32>
    %85 = arith.addf %80, %84 : vector<1x128xf32>
    %c1_29 = arith.constant 1 : index
    %c2_30 = arith.constant 2 : index
    %86 = memref.load %arg2[%c1_29, %c2_30] : memref<6x12xf32, #tpu.memory_space<smem>>
    %87 = vector.extract_strided_slice %0 {offsets = [1, 0], sizes = [1, 128], strides = [1, 1]} : vector<6x128xf32> to vector<1x128xf32>
    %88 = vector.broadcast %86 : f32 to vector<1x128xf32>
    %89 = arith.mulf %88, %87 : vector<1x128xf32>
    %90 = arith.addf %85, %89 : vector<1x128xf32>
    %c2_31 = arith.constant 2 : index
    %c2_32 = arith.constant 2 : index
    %91 = memref.load %arg2[%c2_31, %c2_32] : memref<6x12xf32, #tpu.memory_space<smem>>
    %92 = vector.extract_strided_slice %0 {offsets = [2, 0], sizes = [1, 128], strides = [1, 1]} : vector<6x128xf32> to vector<1x128xf32>
    %93 = vector.broadcast %91 : f32 to vector<1x128xf32>
    %94 = arith.mulf %93, %92 : vector<1x128xf32>
    %95 = arith.addf %90, %94 : vector<1x128xf32>
    %c3_33 = arith.constant 3 : index
    %c2_34 = arith.constant 2 : index
    %96 = memref.load %arg2[%c3_33, %c2_34] : memref<6x12xf32, #tpu.memory_space<smem>>
    %97 = vector.extract_strided_slice %0 {offsets = [3, 0], sizes = [1, 128], strides = [1, 1]} : vector<6x128xf32> to vector<1x128xf32>
    %98 = vector.broadcast %96 : f32 to vector<1x128xf32>
    %99 = arith.mulf %98, %97 : vector<1x128xf32>
    %100 = arith.addf %95, %99 : vector<1x128xf32>
    %c4_35 = arith.constant 4 : index
    %c2_36 = arith.constant 2 : index
    %101 = memref.load %arg2[%c4_35, %c2_36] : memref<6x12xf32, #tpu.memory_space<smem>>
    %102 = vector.extract_strided_slice %0 {offsets = [4, 0], sizes = [1, 128], strides = [1, 1]} : vector<6x128xf32> to vector<1x128xf32>
    %103 = vector.broadcast %101 : f32 to vector<1x128xf32>
    %104 = arith.mulf %103, %102 : vector<1x128xf32>
    %105 = arith.addf %100, %104 : vector<1x128xf32>
    %c5_37 = arith.constant 5 : index
    %c2_38 = arith.constant 2 : index
    %106 = memref.load %arg2[%c5_37, %c2_38] : memref<6x12xf32, #tpu.memory_space<smem>>
    %107 = vector.extract_strided_slice %0 {offsets = [5, 0], sizes = [1, 128], strides = [1, 1]} : vector<6x128xf32> to vector<1x128xf32>
    %108 = vector.broadcast %106 : f32 to vector<1x128xf32>
    %109 = arith.mulf %108, %107 : vector<1x128xf32>
    %110 = arith.addf %105, %109 : vector<1x128xf32>
    %c2_39 = arith.constant 2 : index
    %111 = memref.load %arg4[%c2_39] : memref<12xf32, #tpu.memory_space<smem>>
    %cst_40 = arith.constant 0.000000e+00 : f32
    %112 = vector.broadcast %cst_40 : f32 to vector<1x128xf32>
    %113 = arith.maximumf %110, %112 : vector<1x128xf32>
    %114 = vector.broadcast %111 : f32 to vector<1x128xf32>
    %115 = arith.mulf %114, %113 : vector<1x128xf32>
    %116 = arith.addf %78, %115 : vector<1x128xf32>
    %c3_41 = arith.constant 3 : index
    %117 = memref.load %arg3[%c3_41] : memref<12xf32, #tpu.memory_space<smem>>
    %118 = vector.broadcast %117 : f32 to vector<1x128xf32>
    %c0_42 = arith.constant 0 : index
    %c3_43 = arith.constant 3 : index
    %119 = memref.load %arg2[%c0_42, %c3_43] : memref<6x12xf32, #tpu.memory_space<smem>>
    %120 = vector.extract_strided_slice %0 {offsets = [0, 0], sizes = [1, 128], strides = [1, 1]} : vector<6x128xf32> to vector<1x128xf32>
    %121 = vector.broadcast %119 : f32 to vector<1x128xf32>
    %122 = arith.mulf %121, %120 : vector<1x128xf32>
    %123 = arith.addf %118, %122 : vector<1x128xf32>
    %c1_44 = arith.constant 1 : index
    %c3_45 = arith.constant 3 : index
    %124 = memref.load %arg2[%c1_44, %c3_45] : memref<6x12xf32, #tpu.memory_space<smem>>
    %125 = vector.extract_strided_slice %0 {offsets = [1, 0], sizes = [1, 128], strides = [1, 1]} : vector<6x128xf32> to vector<1x128xf32>
    %126 = vector.broadcast %124 : f32 to vector<1x128xf32>
    %127 = arith.mulf %126, %125 : vector<1x128xf32>
    %128 = arith.addf %123, %127 : vector<1x128xf32>
    %c2_46 = arith.constant 2 : index
    %c3_47 = arith.constant 3 : index
    %129 = memref.load %arg2[%c2_46, %c3_47] : memref<6x12xf32, #tpu.memory_space<smem>>
    %130 = vector.extract_strided_slice %0 {offsets = [2, 0], sizes = [1, 128], strides = [1, 1]} : vector<6x128xf32> to vector<1x128xf32>
    %131 = vector.broadcast %129 : f32 to vector<1x128xf32>
    %132 = arith.mulf %131, %130 : vector<1x128xf32>
    %133 = arith.addf %128, %132 : vector<1x128xf32>
    %c3_48 = arith.constant 3 : index
    %c3_49 = arith.constant 3 : index
    %134 = memref.load %arg2[%c3_48, %c3_49] : memref<6x12xf32, #tpu.memory_space<smem>>
    %135 = vector.extract_strided_slice %0 {offsets = [3, 0], sizes = [1, 128], strides = [1, 1]} : vector<6x128xf32> to vector<1x128xf32>
    %136 = vector.broadcast %134 : f32 to vector<1x128xf32>
    %137 = arith.mulf %136, %135 : vector<1x128xf32>
    %138 = arith.addf %133, %137 : vector<1x128xf32>
    %c4_50 = arith.constant 4 : index
    %c3_51 = arith.constant 3 : index
    %139 = memref.load %arg2[%c4_50, %c3_51] : memref<6x12xf32, #tpu.memory_space<smem>>
    %140 = vector.extract_strided_slice %0 {offsets = [4, 0], sizes = [1, 128], strides = [1, 1]} : vector<6x128xf32> to vector<1x128xf32>
    %141 = vector.broadcast %139 : f32 to vector<1x128xf32>
    %142 = arith.mulf %141, %140 : vector<1x128xf32>
    %143 = arith.addf %138, %142 : vector<1x128xf32>
    %c5_52 = arith.constant 5 : index
    %c3_53 = arith.constant 3 : index
    %144 = memref.load %arg2[%c5_52, %c3_53] : memref<6x12xf32, #tpu.memory_space<smem>>
    %145 = vector.extract_strided_slice %0 {offsets = [5, 0], sizes = [1, 128], strides = [1, 1]} : vector<6x128xf32> to vector<1x128xf32>
    %146 = vector.broadcast %144 : f32 to vector<1x128xf32>
    %147 = arith.mulf %146, %145 : vector<1x128xf32>
    %148 = arith.addf %143, %147 : vector<1x128xf32>
    %c3_54 = arith.constant 3 : index
    %149 = memref.load %arg4[%c3_54] : memref<12xf32, #tpu.memory_space<smem>>
    %cst_55 = arith.constant 0.000000e+00 : f32
    %150 = vector.broadcast %cst_55 : f32 to vector<1x128xf32>
    %151 = arith.maximumf %148, %150 : vector<1x128xf32>
    %152 = vector.broadcast %149 : f32 to vector<1x128xf32>
    %153 = arith.mulf %152, %151 : vector<1x128xf32>
    %154 = arith.addf %116, %153 : vector<1x128xf32>
    %c4_56 = arith.constant 4 : index
    %155 = memref.load %arg3[%c4_56] : memref<12xf32, #tpu.memory_space<smem>>
    %156 = vector.broadcast %155 : f32 to vector<1x128xf32>
    %c0_57 = arith.constant 0 : index
    %c4_58 = arith.constant 4 : index
    %157 = memref.load %arg2[%c0_57, %c4_58] : memref<6x12xf32, #tpu.memory_space<smem>>
    %158 = vector.extract_strided_slice %0 {offsets = [0, 0], sizes = [1, 128], strides = [1, 1]} : vector<6x128xf32> to vector<1x128xf32>
    %159 = vector.broadcast %157 : f32 to vector<1x128xf32>
    %160 = arith.mulf %159, %158 : vector<1x128xf32>
    %161 = arith.addf %156, %160 : vector<1x128xf32>
    %c1_59 = arith.constant 1 : index
    %c4_60 = arith.constant 4 : index
    %162 = memref.load %arg2[%c1_59, %c4_60] : memref<6x12xf32, #tpu.memory_space<smem>>
    %163 = vector.extract_strided_slice %0 {offsets = [1, 0], sizes = [1, 128], strides = [1, 1]} : vector<6x128xf32> to vector<1x128xf32>
    %164 = vector.broadcast %162 : f32 to vector<1x128xf32>
    %165 = arith.mulf %164, %163 : vector<1x128xf32>
    %166 = arith.addf %161, %165 : vector<1x128xf32>
    %c2_61 = arith.constant 2 : index
    %c4_62 = arith.constant 4 : index
    %167 = memref.load %arg2[%c2_61, %c4_62] : memref<6x12xf32, #tpu.memory_space<smem>>
    %168 = vector.extract_strided_slice %0 {offsets = [2, 0], sizes = [1, 128], strides = [1, 1]} : vector<6x128xf32> to vector<1x128xf32>
    %169 = vector.broadcast %167 : f32 to vector<1x128xf32>
    %170 = arith.mulf %169, %168 : vector<1x128xf32>
    %171 = arith.addf %166, %170 : vector<1x128xf32>
    %c3_63 = arith.constant 3 : index
    %c4_64 = arith.constant 4 : index
    %172 = memref.load %arg2[%c3_63, %c4_64] : memref<6x12xf32, #tpu.memory_space<smem>>
    %173 = vector.extract_strided_slice %0 {offsets = [3, 0], sizes = [1, 128], strides = [1, 1]} : vector<6x128xf32> to vector<1x128xf32>
    %174 = vector.broadcast %172 : f32 to vector<1x128xf32>
    %175 = arith.mulf %174, %173 : vector<1x128xf32>
    %176 = arith.addf %171, %175 : vector<1x128xf32>
    %c4_65 = arith.constant 4 : index
    %c4_66 = arith.constant 4 : index
    %177 = memref.load %arg2[%c4_65, %c4_66] : memref<6x12xf32, #tpu.memory_space<smem>>
    %178 = vector.extract_strided_slice %0 {offsets = [4, 0], sizes = [1, 128], strides = [1, 1]} : vector<6x128xf32> to vector<1x128xf32>
    %179 = vector.broadcast %177 : f32 to vector<1x128xf32>
    %180 = arith.mulf %179, %178 : vector<1x128xf32>
    %181 = arith.addf %176, %180 : vector<1x128xf32>
    %c5_67 = arith.constant 5 : index
    %c4_68 = arith.constant 4 : index
    %182 = memref.load %arg2[%c5_67, %c4_68] : memref<6x12xf32, #tpu.memory_space<smem>>
    %183 = vector.extract_strided_slice %0 {offsets = [5, 0], sizes = [1, 128], strides = [1, 1]} : vector<6x128xf32> to vector<1x128xf32>
    %184 = vector.broadcast %182 : f32 to vector<1x128xf32>
    %185 = arith.mulf %184, %183 : vector<1x128xf32>
    %186 = arith.addf %181, %185 : vector<1x128xf32>
    %c4_69 = arith.constant 4 : index
    %187 = memref.load %arg4[%c4_69] : memref<12xf32, #tpu.memory_space<smem>>
    %cst_70 = arith.constant 0.000000e+00 : f32
    %188 = vector.broadcast %cst_70 : f32 to vector<1x128xf32>
    %189 = arith.maximumf %186, %188 : vector<1x128xf32>
    %190 = vector.broadcast %187 : f32 to vector<1x128xf32>
    %191 = arith.mulf %190, %189 : vector<1x128xf32>
    %192 = arith.addf %154, %191 : vector<1x128xf32>
    %c5_71 = arith.constant 5 : index
    %193 = memref.load %arg3[%c5_71] : memref<12xf32, #tpu.memory_space<smem>>
    %194 = vector.broadcast %193 : f32 to vector<1x128xf32>
    %c0_72 = arith.constant 0 : index
    %c5_73 = arith.constant 5 : index
    %195 = memref.load %arg2[%c0_72, %c5_73] : memref<6x12xf32, #tpu.memory_space<smem>>
    %196 = vector.extract_strided_slice %0 {offsets = [0, 0], sizes = [1, 128], strides = [1, 1]} : vector<6x128xf32> to vector<1x128xf32>
    %197 = vector.broadcast %195 : f32 to vector<1x128xf32>
    %198 = arith.mulf %197, %196 : vector<1x128xf32>
    %199 = arith.addf %194, %198 : vector<1x128xf32>
    %c1_74 = arith.constant 1 : index
    %c5_75 = arith.constant 5 : index
    %200 = memref.load %arg2[%c1_74, %c5_75] : memref<6x12xf32, #tpu.memory_space<smem>>
    %201 = vector.extract_strided_slice %0 {offsets = [1, 0], sizes = [1, 128], strides = [1, 1]} : vector<6x128xf32> to vector<1x128xf32>
    %202 = vector.broadcast %200 : f32 to vector<1x128xf32>
    %203 = arith.mulf %202, %201 : vector<1x128xf32>
    %204 = arith.addf %199, %203 : vector<1x128xf32>
    %c2_76 = arith.constant 2 : index
    %c5_77 = arith.constant 5 : index
    %205 = memref.load %arg2[%c2_76, %c5_77] : memref<6x12xf32, #tpu.memory_space<smem>>
    %206 = vector.extract_strided_slice %0 {offsets = [2, 0], sizes = [1, 128], strides = [1, 1]} : vector<6x128xf32> to vector<1x128xf32>
    %207 = vector.broadcast %205 : f32 to vector<1x128xf32>
    %208 = arith.mulf %207, %206 : vector<1x128xf32>
    %209 = arith.addf %204, %208 : vector<1x128xf32>
    %c3_78 = arith.constant 3 : index
    %c5_79 = arith.constant 5 : index
    %210 = memref.load %arg2[%c3_78, %c5_79] : memref<6x12xf32, #tpu.memory_space<smem>>
    %211 = vector.extract_strided_slice %0 {offsets = [3, 0], sizes = [1, 128], strides = [1, 1]} : vector<6x128xf32> to vector<1x128xf32>
    %212 = vector.broadcast %210 : f32 to vector<1x128xf32>
    %213 = arith.mulf %212, %211 : vector<1x128xf32>
    %214 = arith.addf %209, %213 : vector<1x128xf32>
    %c4_80 = arith.constant 4 : index
    %c5_81 = arith.constant 5 : index
    %215 = memref.load %arg2[%c4_80, %c5_81] : memref<6x12xf32, #tpu.memory_space<smem>>
    %216 = vector.extract_strided_slice %0 {offsets = [4, 0], sizes = [1, 128], strides = [1, 1]} : vector<6x128xf32> to vector<1x128xf32>
    %217 = vector.broadcast %215 : f32 to vector<1x128xf32>
    %218 = arith.mulf %217, %216 : vector<1x128xf32>
    %219 = arith.addf %214, %218 : vector<1x128xf32>
    %c5_82 = arith.constant 5 : index
    %c5_83 = arith.constant 5 : index
    %220 = memref.load %arg2[%c5_82, %c5_83] : memref<6x12xf32, #tpu.memory_space<smem>>
    %221 = vector.extract_strided_slice %0 {offsets = [5, 0], sizes = [1, 128], strides = [1, 1]} : vector<6x128xf32> to vector<1x128xf32>
    %222 = vector.broadcast %220 : f32 to vector<1x128xf32>
    %223 = arith.mulf %222, %221 : vector<1x128xf32>
    %224 = arith.addf %219, %223 : vector<1x128xf32>
    %c5_84 = arith.constant 5 : index
    %225 = memref.load %arg4[%c5_84] : memref<12xf32, #tpu.memory_space<smem>>
    %cst_85 = arith.constant 0.000000e+00 : f32
    %226 = vector.broadcast %cst_85 : f32 to vector<1x128xf32>
    %227 = arith.maximumf %224, %226 : vector<1x128xf32>
    %228 = vector.broadcast %225 : f32 to vector<1x128xf32>
    %229 = arith.mulf %228, %227 : vector<1x128xf32>
    %230 = arith.addf %192, %229 : vector<1x128xf32>
    %c6 = arith.constant 6 : index
    %231 = memref.load %arg3[%c6] : memref<12xf32, #tpu.memory_space<smem>>
    %232 = vector.broadcast %231 : f32 to vector<1x128xf32>
    %c0_86 = arith.constant 0 : index
    %c6_87 = arith.constant 6 : index
    %233 = memref.load %arg2[%c0_86, %c6_87] : memref<6x12xf32, #tpu.memory_space<smem>>
    %234 = vector.extract_strided_slice %0 {offsets = [0, 0], sizes = [1, 128], strides = [1, 1]} : vector<6x128xf32> to vector<1x128xf32>
    %235 = vector.broadcast %233 : f32 to vector<1x128xf32>
    %236 = arith.mulf %235, %234 : vector<1x128xf32>
    %237 = arith.addf %232, %236 : vector<1x128xf32>
    %c1_88 = arith.constant 1 : index
    %c6_89 = arith.constant 6 : index
    %238 = memref.load %arg2[%c1_88, %c6_89] : memref<6x12xf32, #tpu.memory_space<smem>>
    %239 = vector.extract_strided_slice %0 {offsets = [1, 0], sizes = [1, 128], strides = [1, 1]} : vector<6x128xf32> to vector<1x128xf32>
    %240 = vector.broadcast %238 : f32 to vector<1x128xf32>
    %241 = arith.mulf %240, %239 : vector<1x128xf32>
    %242 = arith.addf %237, %241 : vector<1x128xf32>
    %c2_90 = arith.constant 2 : index
    %c6_91 = arith.constant 6 : index
    %243 = memref.load %arg2[%c2_90, %c6_91] : memref<6x12xf32, #tpu.memory_space<smem>>
    %244 = vector.extract_strided_slice %0 {offsets = [2, 0], sizes = [1, 128], strides = [1, 1]} : vector<6x128xf32> to vector<1x128xf32>
    %245 = vector.broadcast %243 : f32 to vector<1x128xf32>
    %246 = arith.mulf %245, %244 : vector<1x128xf32>
    %247 = arith.addf %242, %246 : vector<1x128xf32>
    %c3_92 = arith.constant 3 : index
    %c6_93 = arith.constant 6 : index
    %248 = memref.load %arg2[%c3_92, %c6_93] : memref<6x12xf32, #tpu.memory_space<smem>>
    %249 = vector.extract_strided_slice %0 {offsets = [3, 0], sizes = [1, 128], strides = [1, 1]} : vector<6x128xf32> to vector<1x128xf32>
    %250 = vector.broadcast %248 : f32 to vector<1x128xf32>
    %251 = arith.mulf %250, %249 : vector<1x128xf32>
    %252 = arith.addf %247, %251 : vector<1x128xf32>
    %c4_94 = arith.constant 4 : index
    %c6_95 = arith.constant 6 : index
    %253 = memref.load %arg2[%c4_94, %c6_95] : memref<6x12xf32, #tpu.memory_space<smem>>
    %254 = vector.extract_strided_slice %0 {offsets = [4, 0], sizes = [1, 128], strides = [1, 1]} : vector<6x128xf32> to vector<1x128xf32>
    %255 = vector.broadcast %253 : f32 to vector<1x128xf32>
    %256 = arith.mulf %255, %254 : vector<1x128xf32>
    %257 = arith.addf %252, %256 : vector<1x128xf32>
    %c5_96 = arith.constant 5 : index
    %c6_97 = arith.constant 6 : index
    %258 = memref.load %arg2[%c5_96, %c6_97] : memref<6x12xf32, #tpu.memory_space<smem>>
    %259 = vector.extract_strided_slice %0 {offsets = [5, 0], sizes = [1, 128], strides = [1, 1]} : vector<6x128xf32> to vector<1x128xf32>
    %260 = vector.broadcast %258 : f32 to vector<1x128xf32>
    %261 = arith.mulf %260, %259 : vector<1x128xf32>
    %262 = arith.addf %257, %261 : vector<1x128xf32>
    %c6_98 = arith.constant 6 : index
    %263 = memref.load %arg4[%c6_98] : memref<12xf32, #tpu.memory_space<smem>>
    %cst_99 = arith.constant 0.000000e+00 : f32
    %264 = vector.broadcast %cst_99 : f32 to vector<1x128xf32>
    %265 = arith.maximumf %262, %264 : vector<1x128xf32>
    %266 = vector.broadcast %263 : f32 to vector<1x128xf32>
    %267 = arith.mulf %266, %265 : vector<1x128xf32>
    %268 = arith.addf %230, %267 : vector<1x128xf32>
    %c7 = arith.constant 7 : index
    %269 = memref.load %arg3[%c7] : memref<12xf32, #tpu.memory_space<smem>>
    %270 = vector.broadcast %269 : f32 to vector<1x128xf32>
    %c0_100 = arith.constant 0 : index
    %c7_101 = arith.constant 7 : index
    %271 = memref.load %arg2[%c0_100, %c7_101] : memref<6x12xf32, #tpu.memory_space<smem>>
    %272 = vector.extract_strided_slice %0 {offsets = [0, 0], sizes = [1, 128], strides = [1, 1]} : vector<6x128xf32> to vector<1x128xf32>
    %273 = vector.broadcast %271 : f32 to vector<1x128xf32>
    %274 = arith.mulf %273, %272 : vector<1x128xf32>
    %275 = arith.addf %270, %274 : vector<1x128xf32>
    %c1_102 = arith.constant 1 : index
    %c7_103 = arith.constant 7 : index
    %276 = memref.load %arg2[%c1_102, %c7_103] : memref<6x12xf32, #tpu.memory_space<smem>>
    %277 = vector.extract_strided_slice %0 {offsets = [1, 0], sizes = [1, 128], strides = [1, 1]} : vector<6x128xf32> to vector<1x128xf32>
    %278 = vector.broadcast %276 : f32 to vector<1x128xf32>
    %279 = arith.mulf %278, %277 : vector<1x128xf32>
    %280 = arith.addf %275, %279 : vector<1x128xf32>
    %c2_104 = arith.constant 2 : index
    %c7_105 = arith.constant 7 : index
    %281 = memref.load %arg2[%c2_104, %c7_105] : memref<6x12xf32, #tpu.memory_space<smem>>
    %282 = vector.extract_strided_slice %0 {offsets = [2, 0], sizes = [1, 128], strides = [1, 1]} : vector<6x128xf32> to vector<1x128xf32>
    %283 = vector.broadcast %281 : f32 to vector<1x128xf32>
    %284 = arith.mulf %283, %282 : vector<1x128xf32>
    %285 = arith.addf %280, %284 : vector<1x128xf32>
    %c3_106 = arith.constant 3 : index
    %c7_107 = arith.constant 7 : index
    %286 = memref.load %arg2[%c3_106, %c7_107] : memref<6x12xf32, #tpu.memory_space<smem>>
    %287 = vector.extract_strided_slice %0 {offsets = [3, 0], sizes = [1, 128], strides = [1, 1]} : vector<6x128xf32> to vector<1x128xf32>
    %288 = vector.broadcast %286 : f32 to vector<1x128xf32>
    %289 = arith.mulf %288, %287 : vector<1x128xf32>
    %290 = arith.addf %285, %289 : vector<1x128xf32>
    %c4_108 = arith.constant 4 : index
    %c7_109 = arith.constant 7 : index
    %291 = memref.load %arg2[%c4_108, %c7_109] : memref<6x12xf32, #tpu.memory_space<smem>>
    %292 = vector.extract_strided_slice %0 {offsets = [4, 0], sizes = [1, 128], strides = [1, 1]} : vector<6x128xf32> to vector<1x128xf32>
    %293 = vector.broadcast %291 : f32 to vector<1x128xf32>
    %294 = arith.mulf %293, %292 : vector<1x128xf32>
    %295 = arith.addf %290, %294 : vector<1x128xf32>
    %c5_110 = arith.constant 5 : index
    %c7_111 = arith.constant 7 : index
    %296 = memref.load %arg2[%c5_110, %c7_111] : memref<6x12xf32, #tpu.memory_space<smem>>
    %297 = vector.extract_strided_slice %0 {offsets = [5, 0], sizes = [1, 128], strides = [1, 1]} : vector<6x128xf32> to vector<1x128xf32>
    %298 = vector.broadcast %296 : f32 to vector<1x128xf32>
    %299 = arith.mulf %298, %297 : vector<1x128xf32>
    %300 = arith.addf %295, %299 : vector<1x128xf32>
    %c7_112 = arith.constant 7 : index
    %301 = memref.load %arg4[%c7_112] : memref<12xf32, #tpu.memory_space<smem>>
    %cst_113 = arith.constant 0.000000e+00 : f32
    %302 = vector.broadcast %cst_113 : f32 to vector<1x128xf32>
    %303 = arith.maximumf %300, %302 : vector<1x128xf32>
    %304 = vector.broadcast %301 : f32 to vector<1x128xf32>
    %305 = arith.mulf %304, %303 : vector<1x128xf32>
    %306 = arith.addf %268, %305 : vector<1x128xf32>
    %c8 = arith.constant 8 : index
    %307 = memref.load %arg3[%c8] : memref<12xf32, #tpu.memory_space<smem>>
    %308 = vector.broadcast %307 : f32 to vector<1x128xf32>
    %c0_114 = arith.constant 0 : index
    %c8_115 = arith.constant 8 : index
    %309 = memref.load %arg2[%c0_114, %c8_115] : memref<6x12xf32, #tpu.memory_space<smem>>
    %310 = vector.extract_strided_slice %0 {offsets = [0, 0], sizes = [1, 128], strides = [1, 1]} : vector<6x128xf32> to vector<1x128xf32>
    %311 = vector.broadcast %309 : f32 to vector<1x128xf32>
    %312 = arith.mulf %311, %310 : vector<1x128xf32>
    %313 = arith.addf %308, %312 : vector<1x128xf32>
    %c1_116 = arith.constant 1 : index
    %c8_117 = arith.constant 8 : index
    %314 = memref.load %arg2[%c1_116, %c8_117] : memref<6x12xf32, #tpu.memory_space<smem>>
    %315 = vector.extract_strided_slice %0 {offsets = [1, 0], sizes = [1, 128], strides = [1, 1]} : vector<6x128xf32> to vector<1x128xf32>
    %316 = vector.broadcast %314 : f32 to vector<1x128xf32>
    %317 = arith.mulf %316, %315 : vector<1x128xf32>
    %318 = arith.addf %313, %317 : vector<1x128xf32>
    %c2_118 = arith.constant 2 : index
    %c8_119 = arith.constant 8 : index
    %319 = memref.load %arg2[%c2_118, %c8_119] : memref<6x12xf32, #tpu.memory_space<smem>>
    %320 = vector.extract_strided_slice %0 {offsets = [2, 0], sizes = [1, 128], strides = [1, 1]} : vector<6x128xf32> to vector<1x128xf32>
    %321 = vector.broadcast %319 : f32 to vector<1x128xf32>
    %322 = arith.mulf %321, %320 : vector<1x128xf32>
    %323 = arith.addf %318, %322 : vector<1x128xf32>
    %c3_120 = arith.constant 3 : index
    %c8_121 = arith.constant 8 : index
    %324 = memref.load %arg2[%c3_120, %c8_121] : memref<6x12xf32, #tpu.memory_space<smem>>
    %325 = vector.extract_strided_slice %0 {offsets = [3, 0], sizes = [1, 128], strides = [1, 1]} : vector<6x128xf32> to vector<1x128xf32>
    %326 = vector.broadcast %324 : f32 to vector<1x128xf32>
    %327 = arith.mulf %326, %325 : vector<1x128xf32>
    %328 = arith.addf %323, %327 : vector<1x128xf32>
    %c4_122 = arith.constant 4 : index
    %c8_123 = arith.constant 8 : index
    %329 = memref.load %arg2[%c4_122, %c8_123] : memref<6x12xf32, #tpu.memory_space<smem>>
    %330 = vector.extract_strided_slice %0 {offsets = [4, 0], sizes = [1, 128], strides = [1, 1]} : vector<6x128xf32> to vector<1x128xf32>
    %331 = vector.broadcast %329 : f32 to vector<1x128xf32>
    %332 = arith.mulf %331, %330 : vector<1x128xf32>
    %333 = arith.addf %328, %332 : vector<1x128xf32>
    %c5_124 = arith.constant 5 : index
    %c8_125 = arith.constant 8 : index
    %334 = memref.load %arg2[%c5_124, %c8_125] : memref<6x12xf32, #tpu.memory_space<smem>>
    %335 = vector.extract_strided_slice %0 {offsets = [5, 0], sizes = [1, 128], strides = [1, 1]} : vector<6x128xf32> to vector<1x128xf32>
    %336 = vector.broadcast %334 : f32 to vector<1x128xf32>
    %337 = arith.mulf %336, %335 : vector<1x128xf32>
    %338 = arith.addf %333, %337 : vector<1x128xf32>
    %c8_126 = arith.constant 8 : index
    %339 = memref.load %arg4[%c8_126] : memref<12xf32, #tpu.memory_space<smem>>
    %cst_127 = arith.constant 0.000000e+00 : f32
    %340 = vector.broadcast %cst_127 : f32 to vector<1x128xf32>
    %341 = arith.maximumf %338, %340 : vector<1x128xf32>
    %342 = vector.broadcast %339 : f32 to vector<1x128xf32>
    %343 = arith.mulf %342, %341 : vector<1x128xf32>
    %344 = arith.addf %306, %343 : vector<1x128xf32>
    %c9 = arith.constant 9 : index
    %345 = memref.load %arg3[%c9] : memref<12xf32, #tpu.memory_space<smem>>
    %346 = vector.broadcast %345 : f32 to vector<1x128xf32>
    %c0_128 = arith.constant 0 : index
    %c9_129 = arith.constant 9 : index
    %347 = memref.load %arg2[%c0_128, %c9_129] : memref<6x12xf32, #tpu.memory_space<smem>>
    %348 = vector.extract_strided_slice %0 {offsets = [0, 0], sizes = [1, 128], strides = [1, 1]} : vector<6x128xf32> to vector<1x128xf32>
    %349 = vector.broadcast %347 : f32 to vector<1x128xf32>
    %350 = arith.mulf %349, %348 : vector<1x128xf32>
    %351 = arith.addf %346, %350 : vector<1x128xf32>
    %c1_130 = arith.constant 1 : index
    %c9_131 = arith.constant 9 : index
    %352 = memref.load %arg2[%c1_130, %c9_131] : memref<6x12xf32, #tpu.memory_space<smem>>
    %353 = vector.extract_strided_slice %0 {offsets = [1, 0], sizes = [1, 128], strides = [1, 1]} : vector<6x128xf32> to vector<1x128xf32>
    %354 = vector.broadcast %352 : f32 to vector<1x128xf32>
    %355 = arith.mulf %354, %353 : vector<1x128xf32>
    %356 = arith.addf %351, %355 : vector<1x128xf32>
    %c2_132 = arith.constant 2 : index
    %c9_133 = arith.constant 9 : index
    %357 = memref.load %arg2[%c2_132, %c9_133] : memref<6x12xf32, #tpu.memory_space<smem>>
    %358 = vector.extract_strided_slice %0 {offsets = [2, 0], sizes = [1, 128], strides = [1, 1]} : vector<6x128xf32> to vector<1x128xf32>
    %359 = vector.broadcast %357 : f32 to vector<1x128xf32>
    %360 = arith.mulf %359, %358 : vector<1x128xf32>
    %361 = arith.addf %356, %360 : vector<1x128xf32>
    %c3_134 = arith.constant 3 : index
    %c9_135 = arith.constant 9 : index
    %362 = memref.load %arg2[%c3_134, %c9_135] : memref<6x12xf32, #tpu.memory_space<smem>>
    %363 = vector.extract_strided_slice %0 {offsets = [3, 0], sizes = [1, 128], strides = [1, 1]} : vector<6x128xf32> to vector<1x128xf32>
    %364 = vector.broadcast %362 : f32 to vector<1x128xf32>
    %365 = arith.mulf %364, %363 : vector<1x128xf32>
    %366 = arith.addf %361, %365 : vector<1x128xf32>
    %c4_136 = arith.constant 4 : index
    %c9_137 = arith.constant 9 : index
    %367 = memref.load %arg2[%c4_136, %c9_137] : memref<6x12xf32, #tpu.memory_space<smem>>
    %368 = vector.extract_strided_slice %0 {offsets = [4, 0], sizes = [1, 128], strides = [1, 1]} : vector<6x128xf32> to vector<1x128xf32>
    %369 = vector.broadcast %367 : f32 to vector<1x128xf32>
    %370 = arith.mulf %369, %368 : vector<1x128xf32>
    %371 = arith.addf %366, %370 : vector<1x128xf32>
    %c5_138 = arith.constant 5 : index
    %c9_139 = arith.constant 9 : index
    %372 = memref.load %arg2[%c5_138, %c9_139] : memref<6x12xf32, #tpu.memory_space<smem>>
    %373 = vector.extract_strided_slice %0 {offsets = [5, 0], sizes = [1, 128], strides = [1, 1]} : vector<6x128xf32> to vector<1x128xf32>
    %374 = vector.broadcast %372 : f32 to vector<1x128xf32>
    %375 = arith.mulf %374, %373 : vector<1x128xf32>
    %376 = arith.addf %371, %375 : vector<1x128xf32>
    %c9_140 = arith.constant 9 : index
    %377 = memref.load %arg4[%c9_140] : memref<12xf32, #tpu.memory_space<smem>>
    %cst_141 = arith.constant 0.000000e+00 : f32
    %378 = vector.broadcast %cst_141 : f32 to vector<1x128xf32>
    %379 = arith.maximumf %376, %378 : vector<1x128xf32>
    %380 = vector.broadcast %377 : f32 to vector<1x128xf32>
    %381 = arith.mulf %380, %379 : vector<1x128xf32>
    %382 = arith.addf %344, %381 : vector<1x128xf32>
    %c10 = arith.constant 10 : index
    %383 = memref.load %arg3[%c10] : memref<12xf32, #tpu.memory_space<smem>>
    %384 = vector.broadcast %383 : f32 to vector<1x128xf32>
    %c0_142 = arith.constant 0 : index
    %c10_143 = arith.constant 10 : index
    %385 = memref.load %arg2[%c0_142, %c10_143] : memref<6x12xf32, #tpu.memory_space<smem>>
    %386 = vector.extract_strided_slice %0 {offsets = [0, 0], sizes = [1, 128], strides = [1, 1]} : vector<6x128xf32> to vector<1x128xf32>
    %387 = vector.broadcast %385 : f32 to vector<1x128xf32>
    %388 = arith.mulf %387, %386 : vector<1x128xf32>
    %389 = arith.addf %384, %388 : vector<1x128xf32>
    %c1_144 = arith.constant 1 : index
    %c10_145 = arith.constant 10 : index
    %390 = memref.load %arg2[%c1_144, %c10_145] : memref<6x12xf32, #tpu.memory_space<smem>>
    %391 = vector.extract_strided_slice %0 {offsets = [1, 0], sizes = [1, 128], strides = [1, 1]} : vector<6x128xf32> to vector<1x128xf32>
    %392 = vector.broadcast %390 : f32 to vector<1x128xf32>
    %393 = arith.mulf %392, %391 : vector<1x128xf32>
    %394 = arith.addf %389, %393 : vector<1x128xf32>
    %c2_146 = arith.constant 2 : index
    %c10_147 = arith.constant 10 : index
    %395 = memref.load %arg2[%c2_146, %c10_147] : memref<6x12xf32, #tpu.memory_space<smem>>
    %396 = vector.extract_strided_slice %0 {offsets = [2, 0], sizes = [1, 128], strides = [1, 1]} : vector<6x128xf32> to vector<1x128xf32>
    %397 = vector.broadcast %395 : f32 to vector<1x128xf32>
    %398 = arith.mulf %397, %396 : vector<1x128xf32>
    %399 = arith.addf %394, %398 : vector<1x128xf32>
    %c3_148 = arith.constant 3 : index
    %c10_149 = arith.constant 10 : index
    %400 = memref.load %arg2[%c3_148, %c10_149] : memref<6x12xf32, #tpu.memory_space<smem>>
    %401 = vector.extract_strided_slice %0 {offsets = [3, 0], sizes = [1, 128], strides = [1, 1]} : vector<6x128xf32> to vector<1x128xf32>
    %402 = vector.broadcast %400 : f32 to vector<1x128xf32>
    %403 = arith.mulf %402, %401 : vector<1x128xf32>
    %404 = arith.addf %399, %403 : vector<1x128xf32>
    %c4_150 = arith.constant 4 : index
    %c10_151 = arith.constant 10 : index
    %405 = memref.load %arg2[%c4_150, %c10_151] : memref<6x12xf32, #tpu.memory_space<smem>>
    %406 = vector.extract_strided_slice %0 {offsets = [4, 0], sizes = [1, 128], strides = [1, 1]} : vector<6x128xf32> to vector<1x128xf32>
    %407 = vector.broadcast %405 : f32 to vector<1x128xf32>
    %408 = arith.mulf %407, %406 : vector<1x128xf32>
    %409 = arith.addf %404, %408 : vector<1x128xf32>
    %c5_152 = arith.constant 5 : index
    %c10_153 = arith.constant 10 : index
    %410 = memref.load %arg2[%c5_152, %c10_153] : memref<6x12xf32, #tpu.memory_space<smem>>
    %411 = vector.extract_strided_slice %0 {offsets = [5, 0], sizes = [1, 128], strides = [1, 1]} : vector<6x128xf32> to vector<1x128xf32>
    %412 = vector.broadcast %410 : f32 to vector<1x128xf32>
    %413 = arith.mulf %412, %411 : vector<1x128xf32>
    %414 = arith.addf %409, %413 : vector<1x128xf32>
    %c10_154 = arith.constant 10 : index
    %415 = memref.load %arg4[%c10_154] : memref<12xf32, #tpu.memory_space<smem>>
    %cst_155 = arith.constant 0.000000e+00 : f32
    %416 = vector.broadcast %cst_155 : f32 to vector<1x128xf32>
    %417 = arith.maximumf %414, %416 : vector<1x128xf32>
    %418 = vector.broadcast %415 : f32 to vector<1x128xf32>
    %419 = arith.mulf %418, %417 : vector<1x128xf32>
    %420 = arith.addf %382, %419 : vector<1x128xf32>
    %c11 = arith.constant 11 : index
    %421 = memref.load %arg3[%c11] : memref<12xf32, #tpu.memory_space<smem>>
    %422 = vector.broadcast %421 : f32 to vector<1x128xf32>
    %c0_156 = arith.constant 0 : index
    %c11_157 = arith.constant 11 : index
    %423 = memref.load %arg2[%c0_156, %c11_157] : memref<6x12xf32, #tpu.memory_space<smem>>
    %424 = vector.extract_strided_slice %0 {offsets = [0, 0], sizes = [1, 128], strides = [1, 1]} : vector<6x128xf32> to vector<1x128xf32>
    %425 = vector.broadcast %423 : f32 to vector<1x128xf32>
    %426 = arith.mulf %425, %424 : vector<1x128xf32>
    %427 = arith.addf %422, %426 : vector<1x128xf32>
    %c1_158 = arith.constant 1 : index
    %c11_159 = arith.constant 11 : index
    %428 = memref.load %arg2[%c1_158, %c11_159] : memref<6x12xf32, #tpu.memory_space<smem>>
    %429 = vector.extract_strided_slice %0 {offsets = [1, 0], sizes = [1, 128], strides = [1, 1]} : vector<6x128xf32> to vector<1x128xf32>
    %430 = vector.broadcast %428 : f32 to vector<1x128xf32>
    %431 = arith.mulf %430, %429 : vector<1x128xf32>
    %432 = arith.addf %427, %431 : vector<1x128xf32>
    %c2_160 = arith.constant 2 : index
    %c11_161 = arith.constant 11 : index
    %433 = memref.load %arg2[%c2_160, %c11_161] : memref<6x12xf32, #tpu.memory_space<smem>>
    %434 = vector.extract_strided_slice %0 {offsets = [2, 0], sizes = [1, 128], strides = [1, 1]} : vector<6x128xf32> to vector<1x128xf32>
    %435 = vector.broadcast %433 : f32 to vector<1x128xf32>
    %436 = arith.mulf %435, %434 : vector<1x128xf32>
    %437 = arith.addf %432, %436 : vector<1x128xf32>
    %c3_162 = arith.constant 3 : index
    %c11_163 = arith.constant 11 : index
    %438 = memref.load %arg2[%c3_162, %c11_163] : memref<6x12xf32, #tpu.memory_space<smem>>
    %439 = vector.extract_strided_slice %0 {offsets = [3, 0], sizes = [1, 128], strides = [1, 1]} : vector<6x128xf32> to vector<1x128xf32>
    %440 = vector.broadcast %438 : f32 to vector<1x128xf32>
    %441 = arith.mulf %440, %439 : vector<1x128xf32>
    %442 = arith.addf %437, %441 : vector<1x128xf32>
    %c4_164 = arith.constant 4 : index
    %c11_165 = arith.constant 11 : index
    %443 = memref.load %arg2[%c4_164, %c11_165] : memref<6x12xf32, #tpu.memory_space<smem>>
    %444 = vector.extract_strided_slice %0 {offsets = [4, 0], sizes = [1, 128], strides = [1, 1]} : vector<6x128xf32> to vector<1x128xf32>
    %445 = vector.broadcast %443 : f32 to vector<1x128xf32>
    %446 = arith.mulf %445, %444 : vector<1x128xf32>
    %447 = arith.addf %442, %446 : vector<1x128xf32>
    %c5_166 = arith.constant 5 : index
    %c11_167 = arith.constant 11 : index
    %448 = memref.load %arg2[%c5_166, %c11_167] : memref<6x12xf32, #tpu.memory_space<smem>>
    %449 = vector.extract_strided_slice %0 {offsets = [5, 0], sizes = [1, 128], strides = [1, 1]} : vector<6x128xf32> to vector<1x128xf32>
    %450 = vector.broadcast %448 : f32 to vector<1x128xf32>
    %451 = arith.mulf %450, %449 : vector<1x128xf32>
    %452 = arith.addf %447, %451 : vector<1x128xf32>
    %c11_168 = arith.constant 11 : index
    %453 = memref.load %arg4[%c11_168] : memref<12xf32, #tpu.memory_space<smem>>
    %cst_169 = arith.constant 0.000000e+00 : f32
    %454 = vector.broadcast %cst_169 : f32 to vector<1x128xf32>
    %455 = arith.maximumf %452, %454 : vector<1x128xf32>
    %456 = vector.broadcast %453 : f32 to vector<1x128xf32>
    %457 = arith.mulf %456, %455 : vector<1x128xf32>
    %458 = arith.addf %420, %457 : vector<1x128xf32>
    %c0_170 = arith.constant 0 : index
    %c0_171 = arith.constant 0 : index
    %459 = vector.load %arg6[%c0_170, %c0_171] : memref<1x128xf32, #tpu.memory_space<vmem>>, vector<1x128xf32>
    tpu.vector_store %arg6[%c0_170, %c0_171], %458 {strides = array<i32>} : memref<1x128xf32, #tpu.memory_space<vmem>>, vector<1x128xf32>,
    return
  }
  func.func @transform_0(%arg0: i32) -> (i32, i32) {
    %c0_i32 = arith.constant 0 : i32
    %c0_i32_0 = arith.constant 0 : i32
    return %c0_i32, %arg0 : i32, i32
  }
  func.func @transform_1(%arg0: i32) -> (i32, i32) {
    %c0_i32 = arith.constant 0 : i32
    %c0_i32_0 = arith.constant 0 : i32
    %c0_i32_1 = arith.constant 0 : i32
    return %c0_i32, %c0_i32_0 : i32, i32
  }
  func.func @transform_2(%arg0: i32) -> i32 {
    %c0_i32 = arith.constant 0 : i32
    %c0_i32_0 = arith.constant 0 : i32
    return %c0_i32 : i32
  }
  func.func @transform_3(%arg0: i32) -> i32 {
    %c0_i32 = arith.constant 0 : i32
    %c0_i32_0 = arith.constant 0 : i32
    return %c0_i32 : i32
  }
  func.func @transform_4(%arg0: i32) -> i32 {
    %c0_i32 = arith.constant 0 : i32
    %c0_i32_0 = arith.constant 0 : i32
    return %c0_i32 : i32
  }
  func.func @transform_5(%arg0: i32) -> (i32, i32) {
    %c0_i32 = arith.constant 0 : i32
    %c0_i32_0 = arith.constant 0 : i32
    return %c0_i32, %arg0 : i32, i32
  }
}

</mosaic_0001>

<bundles_post_ra>
// kernel: ahi_correction_forward.1
= control target key start
LH: loop header
LB: loop body
LE: loop exit
PB: predicated region body
PF: predicated region fallthrough
CT: control target
= control target key end

     0   :  { %11 = vsyncpa [#allocation4], 0  ;;  %s1075_s0 = inlined_call_operand.vmem [shape: f32[6,128], index: 0, kind: input, shape index: {}]   ;;  %s1076_s1 = inlined_call_operand.vmem [shape: f32[6,12], index: 1, kind: input, shape index: {}]   ;;  %s1077_s2 = inlined_call_operand.vmem [shape: f32[12], index: 2, kind: input, shape index: {}]   ;;  %s1078_s3 = inlined_call_operand.vmem [shape: f32[12], index: 3, kind: input, shape index: {}]   ;;  %s1079_s4 = inlined_call_operand.<no memory space> [shape: f32[1], index: 4, kind: input, shape index: {}]   ;;  %s1080_s5 = inlined_call_operand.vmem [shape: f32[1,128], index: 5, kind: output, shape index: {}]  }
   0x1   :  { %12 = vsyncpa [#allocation6], 0  ;;  %s31_s20 = sshll.u32 %s1077_s2, 4  ;;  %s21_s23 = sshll.u32 %s1076_s1, 4  ;;  %s32_s20 = int_to_ptr.vmem [resolvable:$true] %s31_s20  ;;  %s22_s23 = int_to_ptr.vmem [resolvable:$true] %s21_s23 }
   0x2   :  { %s715_s24 = scalar_lea.vmem %s32_s20, 16  ;;  %p720_p1 = scmp.lt.s32.totalorder %s32_s20, %s32_s20 }
   0x3   :  { %p716_p0 = scmp.ne.s32.totalorder %s32_s20, %s715_s24  ;;  %p721_p2 = scmp.lt.s32.totalorder %s715_s24, %s715_s24 }
   0x5   :  { %p722_p3 = por %p721_p2, %p720_p1 }
   0x7   :  { %p723_p4 = pnand %p722_p3, %p716_p0 }
   0x9   :  { %726 = shalt.err (!%p723_p4)
}
   0xa   :  { %s755_s25 = smov [#allocation5]   ;;  %s727_s26 = scalar_lea.vmem %s22_s23, 128 }
   0xb   :  { %34 = dma.vmem_to_smem %s32_s20, 16, %s755_s25, [#allocation6]  }
   0xc   :  { %p728_p5 = scmp.ne.s32.totalorder %s22_s23, %s727_s26  ;;  %p732_p6 = scmp.lt.s32.totalorder %s22_s23, %s22_s23 }
   0xd   :  { %p733_p7 = scmp.lt.s32.totalorder %s727_s26, %s727_s26 }
   0xf   :  { %p734_p8 = por %p733_p7, %p732_p6 }
  0x11   :  { %p735_p9 = pnand %p734_p8, %p728_p5 }
  0x13   :  { %738 = shalt.err (!%p735_p9)
}
  0x14   :  { %s756_s2 = smov [#allocation3]   ;;  %s41_s28 = sshll.u32 %s1078_s3, 4  ;;  %s42_s28 = int_to_ptr.vmem [resolvable:$true] %s41_s28 }
  0x15   :  { %24 = dma.vmem_to_smem %s22_s23, 128, %s756_s2, [#allocation4]  }
  0x16   :  { %s739_s29 = scalar_lea.vmem %s42_s28, 16  ;;  %p744_p11 = scmp.lt.s32.totalorder %s42_s28, %s42_s28 }
  0x17   :  { %p740_p10 = scmp.ne.s32.totalorder %s42_s28, %s739_s29  ;;  %p745_p12 = scmp.lt.s32.totalorder %s739_s29, %s739_s29 }
  0x19   :  { %p746_p13 = por %p745_p12, %p744_p11 }
  0x1b   :  { %p747_p0 = pnand %p746_p13, %p740_p10 }
  0x1d   :  { %750 = shalt.err (!%p747_p0)
}
  0x1e   :  { %s757_s30 = smov [#allocation7]  }
  0x1f   :  { %44 = dma.vmem_to_smem %s42_s28, 16, %s757_s30, [#allocation6]  }
  0x20   :  { %751 = dma.done.wait [#allocation4], 128  }
  0x21   :  { %752 = vsyncadd [#allocation4], 4294967168 }
  0x22   :  { %753 = dma.done.wait [#allocation6], 32  }
  0x23   :  { %754 = vsyncadd [#allocation6], 4294967264 }
  0x24   :  { %56 = sfence }
  0x25   :  { %s60_s6 = sld [smem:[#allocation5]]  ;;  %v800_v0 = vld [vmem:[%s1075_s0] sm:$0x3f] }
  0x26   :  { %s62_s7 = sld [smem:[#allocation3]] }
  0x27   :  { %s619_s8 = sld [smem:[#allocation3 + $0x80]] }
  0x28   :  { %s620_s9 = sld [smem:[#allocation3 + $0x100]] }
  0x29   :  { %s621_s3 = sld [smem:[#allocation3 + $0x180]] }
  0x2a   :  { %s802_s12 = sld [smem:[#allocation3 + $0x200]] }
  0x2b   :  { %s804_s13 = sld [smem:[#allocation3 + $0x280]]  ;;  %v61_v4 = vstv %s60_s6 }
  0x2c   :  { %v63_v1 = vstv %s62_s7  ;;  %s624_s14 = sld [smem:[#allocation5 + $0x1]] }
  0x2d   :  { %v64_v2 = vmul.f32 %v63_v1, %v800_v0  ;;  %v67_v3 = vstv %s619_s8  ;;  %s625_s15 = sld [smem:[#allocation3 + $0x1]] }
  0x2e   :  { %v68_v5 = vmul.f32 %v67_v3, %v800_v0  ;;  %v74_v6 = vstv %s620_s9  ;;  %s626_s16 = sld [smem:[#allocation3 + $0x81]] }
  0x2f   :  { %s627_s17 = sld [smem:[#allocation3 + $0x101]]  ;;  %v65_v7 = vadd.f32 %v64_v2, %v61_v4  ;;  %v75_v9 = vmul.f32 %v74_v6, %v800_v0  ;;  %v81_v10 = vstv %s621_s3 }
  0x30   :  { %v70_v8 = vrot.slane %v68_v5, 1  ;;  %s628_s0 = sld [smem:[#allocation3 + $0x181]]  ;;  %v82_v11 = vmul.f32 %v81_v10, %v800_v0  ;;  %v88_v12 = vstv %s802_s12 }
  0x31   :  { %s809_s18 = sld [smem:[#allocation3 + $0x201]]  ;;  %v77_v16 = vrot.slane %v75_v9, 2  ;;  %v89_v24 = vmul.f32 %v88_v12, %v800_v0  ;;  %v95_v28 = vstv %s804_s13 }
  0x32   :  { %s811_s19 = sld [smem:[#allocation7]]  ;;  %v107_v13 = vstv %s624_s14  ;;  %v72_v15 = vadd.f32 %v70_v8, %v65_v7  ;;  %v84_v27 = vrot.slane %v82_v11, 3  ;;  %v96_v34 = vmul.f32 %v95_v28, %v800_v0 }
  0x33   :  { %v109_v14 = vstv %s625_s15  ;;  %s815_s20 = sld [smem:[#allocation3 + $0x281]]  ;;  %v91_v33 = vrot.slane %v89_v24, 4 }
  0x34   :  { %v110_v17 = vmul.f32 %v109_v14, %v800_v0  ;;  %v113_v18 = vstv %s626_s16  ;;  %s818_s21 = sld [smem:[#allocation5 + $0x2]]  ;;  %v79_v26 = vadd.f32 %v77_v16, %v72_v15  ;;  %v98_v54 = vrot.slane %v96_v34, 5 }
  0x35   :  { %v114_v19 = vmul.f32 %v113_v18, %v800_v0  ;;  %v120_v20 = vstv %s627_s17  ;;  %s633_s22 = sld [smem:[#allocation3 + $0x2]] }
  0x36   :  { %v111_v21 = vadd.f32 %v110_v17, %v107_v13  ;;  %v121_v22 = vmul.f32 %v120_v20, %v800_v0  ;;  %v127_v23 = vstv %s628_s0  ;;  %s634_s23 = sld [smem:[#allocation3 + $0x82]]  ;;  %v86_v37 = vadd.f32 %v84_v27, %v79_v26 }
  0x37   :  { %v116_v25 = vrot.slane %v114_v19, 1  ;;  %s635_s24 = sld [smem:[#allocation3 + $0x102]]  ;;  %v128_v29 = vmul.f32 %v127_v23, %v800_v0  ;;  %v134_v30 = vstv %s809_s18 }
  0x38   :  { %s636_s25 = sld [smem:[#allocation3 + $0x182]]  ;;  %v123_v32 = vrot.slane %v121_v22, 2  ;;  %v135_v38 = vmul.f32 %v134_v30, %v800_v0  ;;  %v93_v53 = vadd.f32 %v91_v33, %v86_v37  ;;  %v103_v20 = vstv %s811_s19 }
  0x39   :  { %s826_s26 = sld [smem:[#allocation3 + $0x202]]  ;;  %v118_v31 = vadd.f32 %v116_v25, %v111_v21  ;;  %v130_v41 = vrot.slane %v128_v29, 3  ;;  %v141_v42 = vstv %s815_s20 }
  0x3a   :  { %s828_s2 = sld [smem:[#allocation7 + $0x1]]  ;;  %v153_v35 = vstv %s818_s21  ;;  %v142_v55 = vmul.f32 %v141_v42, %v800_v0  ;;  %v137_v58 = vrot.slane %v135_v38, 4  ;;  %v100_v4 = vadd.f32 %v98_v54, %v93_v53 }
  0x3b   :  { %v155_v36 = vstv %s633_s22  ;;  %s832_s1 = sld [smem:[#allocation3 + $0x282]]  ;;  %v125_v45 = vadd.f32 %v123_v32, %v118_v31 }
  0x3c   :  { %v156_v39 = vmul.f32 %v155_v36, %v800_v0  ;;  %v159_v40 = vstv %s634_s23  ;;  %s836_s27 = sld [smem:[#allocation5 + $0x3]]  ;;  %v144_v5 = vrot.slane %v142_v55, 5  ;;  %v102_v19 = vmax.f32 %v100_v4, 0.0 }
  0x3d   :  { %v160_v43 = vmul.f32 %v159_v40, %v800_v0  ;;  %v166_v44 = vstv %s635_s24  ;;  %s641_s28 = sld [smem:[#allocation3 + $0x3]]  ;;  %v132_v57 = vadd.f32 %v130_v41, %v125_v45  ;;  %v59_v41 = vstv %s1079_s4 }
  0x3e   :  { %v157_v46 = vadd.f32 %v156_v39, %v153_v35  ;;  %v167_v47 = vmul.f32 %v166_v44, %v800_v0  ;;  %v173_v48 = vstv %s636_s25  ;;  %s642_s29 = sld [smem:[#allocation3 + $0x83]]  ;;  %v104_v37 = vmul.f32 %v103_v20, %v102_v19 }
  0x3f   :  { %v162_v49 = vrot.slane %v160_v43, 1  ;;  %v174_v50 = vmul.f32 %v173_v48, %v800_v0  ;;  %s643_s30 = sld [smem:[#allocation3 + $0x103]]  ;;  %v180_v52 = vstv %s826_s26  ;;  %v139_v8 = vadd.f32 %v137_v58, %v132_v57 }
  0x40   :  { %v169_v51 = vrot.slane %v167_v47, 2  ;;  %s843_s6 = sld [smem:[#allocation3 + $0x183]]  ;;  %v181_v61 = vmul.f32 %v180_v52, %v800_v0  ;;  %v149_v42 = vstv %s828_s2 }
  0x41   :  { %v164_v56 = vadd.f32 %v162_v49, %v157_v46  ;;  %s846_s7 = sld [smem:[#allocation7 + $0x2]]  ;;  %v176_v59 = vrot.slane %v174_v50, 3  ;;  %v187_v1 = vstv %s832_s1  ;;  %v146_v21 = vadd.f32 %v144_v5, %v139_v8 }
  0x42   :  { %s848_s8 = sld [smem:[#allocation3 + $0x203]]  ;;  %v199_v62 = vstv %s836_s27  ;;  %v183_v13 = vrot.slane %v181_v61, 4  ;;  %v188_v14 = vmul.f32 %v187_v1, %v800_v0  ;;  %v105_v50 = vadd.f32 %v104_v37, %v59_v41 }
  0x43   :  { %v171_v60 = vadd.f32 %v169_v51, %v164_v56  ;;  %v201_v63 = vstv %s641_s28  ;;  %s852_s9 = sld [smem:[#allocation3 + $0x283]]  ;;  %v148_v38 = vmax.f32 %v146_v21, 0.0 }
  0x44   :  { %v202_v2 = vmul.f32 %v201_v63, %v800_v0  ;;  %v205_v3 = vstv %s642_s29  ;;  %s856_s3 = sld [smem:[#allocation5 + $0x4]]  ;;  %v190_v24 = vrot.slane %v188_v14, 5 }
  0x45   :  { %v206_v6 = vmul.f32 %v205_v3, %v800_v0  ;;  %v212_v7 = vstv %s643_s30  ;;  %s649_s10 = sld [smem:[#allocation3 + $0x4]]  ;;  %v178_v12 = vadd.f32 %v176_v59, %v171_v60  ;;  %v150_v51 = vmul.f32 %v149_v42, %v148_v38 }
  0x46   :  { %v203_v9 = vadd.f32 %v202_v2, %v199_v62  ;;  %v213_v10 = vmul.f32 %v212_v7, %v800_v0  ;;  %v219_v11 = vstv %s843_s6  ;;  %s650_s11 = sld [smem:[#allocation3 + $0x84]] }
  0x47   :  { %v208_v15 = vrot.slane %v206_v6, 1  ;;  %s651_s12 = sld [smem:[#allocation3 + $0x104]]  ;;  %v220_v16 = vmul.f32 %v219_v11, %v800_v0  ;;  %v185_v23 = vadd.f32 %v183_v13, %v178_v12  ;;  %v195_v3 = vstv %s846_s7 }
  0x48   :  { %s863_s13 = sld [smem:[#allocation3 + $0x184]]  ;;  %v215_v18 = vrot.slane %v213_v10, 2  ;;  %v226_v22 = vstv %s848_s8  ;;  %v151_v10 = vadd.f32 %v150_v51, %v105_v50 }
  0x49   :  { %v210_v17 = vadd.f32 %v208_v15, %v203_v9  ;;  %s865_s14 = sld [smem:[#allocation7 + $0x3]]  ;;  %v222_v27 = vrot.slane %v220_v16, 3  ;;  %v233_v28 = vstv %s852_s9  ;;  %v227_v32 = vmul.f32 %v226_v22, %v800_v0 }
  0x4a   :  { %s869_s15 = sld [smem:[#allocation3 + $0x204]]  ;;  %v245_v25 = vstv %s856_s3  ;;  %v192_v43 = vadd.f32 %v190_v24, %v185_v23  ;;  %v234_v44 = vmul.f32 %v233_v28, %v800_v0 }
  0x4b   :  { %v247_v26 = vstv %s649_s10  ;;  %s872_s16 = sld [smem:[#allocation3 + $0x284]]  ;;  %v217_v31 = vadd.f32 %v215_v18, %v210_v17  ;;  %v229_v46 = vrot.slane %v227_v32, 4 }
  0x4c   :  { %v248_v29 = vmul.f32 %v247_v26, %v800_v0  ;;  %v251_v30 = vstv %s650_s11  ;;  %s876_s17 = sld [smem:[#allocation5 + $0x5]]  ;;  %v194_v54 = vmax.f32 %v192_v43, 0.0  ;;  %v236_v55 = vrot.slane %v234_v44, 5 }
  0x4d   :  { %v252_v33 = vmul.f32 %v251_v30, %v800_v0  ;;  %v258_v34 = vstv %s651_s12  ;;  %s657_s0 = sld [smem:[#allocation3 + $0x5]]  ;;  %v224_v45 = vadd.f32 %v222_v27, %v217_v31 }
  0x4e   :  { %v249_v35 = vadd.f32 %v248_v29, %v245_v25  ;;  %v259_v36 = vmul.f32 %v258_v34, %v800_v0  ;;  %s881_s18 = sld [smem:[#allocation3 + $0x85]]  ;;  %v265_v40 = vstv %s863_s13  ;;  %v196_v11 = vmul.f32 %v195_v3, %v194_v54 }
  0x4f   :  { %v254_v39 = vrot.slane %v252_v33, 1  ;;  %s884_s19 = sld [smem:[#allocation3 + $0x105]]  ;;  %v266_v49 = vmul.f32 %v265_v40, %v800_v0  ;;  %v231_v58 = vadd.f32 %v229_v46, %v224_v45  ;;  %v241_v30 = vstv %s865_s14 }
  0x50   :  { %s891_s22 = sld [smem:[#allocation3 + $0x185]]  ;;  %v261_v48 = vrot.slane %v259_v36, 2  ;;  %v272_v52 = vstv %s869_s15 }
  0x51   :  { %s893_s23 = sld [smem:[#allocation7 + $0x4]]  ;;  %v256_v47 = vadd.f32 %v254_v39, %v249_v35  ;;  %v268_v63 = vrot.slane %v266_v49, 3  ;;  %v273_v1 = vmul.f32 %v272_v52, %v800_v0  ;;  %v279_v2 = vstv %s872_s16 }
  0x52   :  { %s896_s24 = sld [smem:[#allocation3 + $0x205]]  ;;  %v291_v59 = vstv %s876_s17  ;;  %v238_v8 = vadd.f32 %v236_v55, %v231_v58  ;;  %v280_v9 = vmul.f32 %v279_v2, %v800_v0  ;;  %v197_v39 = vadd.f32 %v196_v11, %v151_v10 }
  0x53   :  { %v293_v53 = vstv %s657_s0  ;;  %s899_s4 = sld [smem:[#allocation3 + $0x285]]  ;;  %v263_v62 = vadd.f32 %v261_v48, %v256_v47  ;;  %v275_v13 = vrot.slane %v273_v1, 4 }
  0x54   :  { %v294_v56 = vmul.f32 %v293_v53, %v800_v0  ;;  %v297_v57 = vstv %s881_s18  ;;  %s903_s25 = sld [smem:[#allocation5 + $0x6]]  ;;  %v240_v22 = vmax.f32 %v238_v8, 0.0  ;;  %v282_v23 = vrot.slane %v280_v9, 5 }
  0x55   :  { %v298_v60 = vmul.f32 %v297_v57, %v800_v0  ;;  %v304_v61 = vstv %s884_s19  ;;  %s665_s26 = sld [smem:[#allocation3 + $0x6]]  ;;  %v270_v12 = vadd.f32 %v268_v63, %v263_v62 }
  0x56   :  { %s666_s2 = sld [smem:[#allocation3 + $0x86]]  ;;  %v305_v4 = vmul.f32 %v304_v61, %v800_v0  ;;  %v295_v5 = vadd.f32 %v294_v56, %v291_v59  ;;  %v311_v7 = vstv %s891_s22  ;;  %v242_v40 = vmul.f32 %v241_v30, %v240_v22 }
  0x57   :  { %s667_s1 = sld [smem:[#allocation3 + $0x106]]  ;;  %v300_v6 = vrot.slane %v298_v60, 1  ;;  %v312_v15 = vmul.f32 %v311_v7, %v800_v0  ;;  %v277_v26 = vadd.f32 %v275_v13, %v270_v12  ;;  %v287_v60 = vstv %s893_s23 }
  0x58   :  { %s913_s27 = sld [smem:[#allocation3 + $0x186]]  ;;  %v307_v14 = vrot.slane %v305_v4, 2  ;;  %v318_v19 = vstv %s896_s24  ;;  %v243_v8 = vadd.f32 %v242_v40, %v197_v39 }
  0x59   :  { %s916_s28 = sld [smem:[#allocation7 + $0x5]]  ;;  %v302_v18 = vadd.f32 %v300_v6, %v295_v5  ;;  %v319_v31 = vmul.f32 %v318_v19, %v800_v0  ;;  %v314_v34 = vrot.slane %v312_v15, 3  ;;  %v325_v35 = vstv %s899_s4 }
  0x5a   :  { %s918_s29 = sld [smem:[#allocation3 + $0x206]]  ;;  %v337_v16 = vstv %s903_s25  ;;  %v284_v41 = vadd.f32 %v282_v23, %v277_v26  ;;  %v326_v44 = vmul.f32 %v325_v35, %v800_v0 }
  0x5b   :  { %v339_v17 = vstv %s665_s26  ;;  %s922_s30 = sld [smem:[#allocation3 + $0x286]]  ;;  %v309_v33 = vadd.f32 %v307_v14, %v302_v18  ;;  %v321_v43 = vrot.slane %v319_v31, 4 }
  0x5c   :  { %v340_v20 = vmul.f32 %v339_v17, %v800_v0  ;;  %v343_v21 = vstv %s666_s2  ;;  %s926_s6 = sld [smem:[#allocation5 + $0x7]]  ;;  %v286_v59 = vmax.f32 %v284_v41, 0.0  ;;  %v328_v1 = vrot.slane %v326_v44, 5 }
  0x5d   :  { %v344_v24 = vmul.f32 %v343_v21, %v800_v0  ;;  %v350_v25 = vstv %s667_s1  ;;  %s673_s7 = sld [smem:[#allocation3 + $0x7]]  ;;  %v316_v47 = vadd.f32 %v314_v34, %v309_v33 }
  0x5e   :  { %v341_v27 = vadd.f32 %v340_v20, %v337_v16  ;;  %v351_v28 = vmul.f32 %v350_v25, %v800_v0  ;;  %v357_v29 = vstv %s913_s27  ;;  %s674_s8 = sld [smem:[#allocation3 + $0x87]]  ;;  %v288_v15 = vmul.f32 %v287_v60, %v286_v59 }
  0x5f   :  { %v346_v32 = vrot.slane %v344_v24, 1  ;;  %s933_s9 = sld [smem:[#allocation3 + $0x107]]  ;;  %v358_v36 = vmul.f32 %v357_v29, %v800_v0  ;;  %v323_v63 = vadd.f32 %v321_v43, %v316_v47 }
  0x60   :  { %s937_s3 = sld [smem:[#allocation3 + $0x187]]  ;;  %v353_v38 = vrot.slane %v351_v28, 2  ;;  %v364_v42 = vstv %s918_s29  ;;  %v289_v39 = vadd.f32 %v288_v15, %v243_v8 }
  0x61   :  { %v348_v37 = vadd.f32 %v346_v32, %v341_v27  ;;  %s939_s10 = sld [smem:[#allocation3 + $0x207]]  ;;  %v360_v48 = vrot.slane %v358_v36, 3  ;;  %v365_v52 = vmul.f32 %v364_v42, %v800_v0  ;;  %v371_v55 = vstv %s922_s30 }
  0x62   :  { %s942_s11 = sld [smem:[#allocation3 + $0x287]]  ;;  %v383_v45 = vstv %s926_s6  ;;  %v372_v6 = vmul.f32 %v371_v55, %v800_v0  ;;  %v330_v16 = vadd.f32 %v328_v1, %v323_v63  ;;  %v333_v32 = vstv %s916_s28 }
  0x63   :  { %s945_s12 = sld [smem:[#allocation7 + $0x6]]  ;;  %v385_v46 = vstv %s673_s7  ;;  %v355_v51 = vadd.f32 %v353_v38, %v348_v37  ;;  %v367_v5 = vrot.slane %v365_v52, 4 }
  0x64   :  { %v386_v49 = vmul.f32 %v385_v46, %v800_v0  ;;  %v389_v50 = vstv %s674_s8  ;;  %s949_s13 = sld [smem:[#allocation5 + $0x8]]  ;;  %v374_v20 = vrot.slane %v372_v6, 5  ;;  %v332_v31 = vmax.f32 %v330_v16, 0.0 }
  0x65   :  { %v390_v53 = vmul.f32 %v389_v50, %v800_v0  ;;  %v396_v54 = vstv %s933_s9  ;;  %s954_s14 = sld [smem:[#allocation3 + $0x8]]  ;;  %v362_v4 = vadd.f32 %v360_v48, %v355_v51 }
  0x66   :  { %v387_v56 = vadd.f32 %v386_v49, %v383_v45  ;;  %v397_v57 = vmul.f32 %v396_v54, %v800_v0  ;;  %v403_v58 = vstv %s937_s3  ;;  %s959_s15 = sld [smem:[#allocation3 + $0x88]]  ;;  %v334_v46 = vmul.f32 %v333_v32, %v332_v31 }
  0x67   :  { %v392_v61 = vrot.slane %v390_v53, 1  ;;  %v404_v62 = vmul.f32 %v403_v58, %v800_v0  ;;  %s963_s16 = sld [smem:[#allocation3 + $0x108]]  ;;  %v410_v3 = vstv %s939_s10  ;;  %v369_v19 = vadd.f32 %v367_v5, %v362_v4 }
  0x68   :  { %v399_v2 = vrot.slane %v397_v57, 2  ;;  %s966_s17 = sld [smem:[#allocation3 + $0x188]]  ;;  %v417_v10 = vstv %s942_s11  ;;  %v411_v12 = vmul.f32 %v410_v3, %v800_v0 }
  0x69   :  { %v394_v7 = vadd.f32 %v392_v61, %v387_v56  ;;  %s969_s0 = sld [smem:[#allocation3 + $0x208]]  ;;  %v406_v9 = vrot.slane %v404_v62, 3  ;;  %v418_v23 = vmul.f32 %v417_v10, %v800_v0  ;;  %v376_v40 = vadd.f32 %v374_v20, %v369_v19 }
  0x6a   :  { %s972_s18 = sld [smem:[#allocation3 + $0x288]]  ;;  %v429_v13 = vstv %s949_s13  ;;  %v413_v28 = vrot.slane %v411_v12, 4  ;;  %v379_v58 = vstv %s945_s12 }
  0x6b   :  { %v401_v11 = vadd.f32 %v399_v2, %v394_v7  ;;  %s975_s19 = sld [smem:[#allocation7 + $0x7]]  ;;  %v431_v14 = vstv %s954_s14  ;;  %v420_v41 = vrot.slane %v418_v23, 5  ;;  %v378_v54 = vmax.f32 %v376_v40, 0.0 }
  0x6c   :  { %v432_v17 = vmul.f32 %v431_v14, %v800_v0  ;;  %v435_v18 = vstv %s959_s15  ;;  %s981_s20 = sld [smem:[#allocation5 + $0x9]]  ;;  %v335_v7 = vadd.f32 %v334_v46, %v289_v39 }
  0x6d   :  { %v436_v21 = vmul.f32 %v435_v18, %v800_v0  ;;  %v442_v22 = vstv %s963_s16  ;;  %s985_s21 = sld [smem:[#allocation3 + $0x9]]  ;;  %v408_v27 = vadd.f32 %v406_v9, %v401_v11  ;;  %v380_v8 = vmul.f32 %v379_v58, %v378_v54 }
  0x6e   :  { %v433_v24 = vadd.f32 %v432_v17, %v429_v13  ;;  %v443_v25 = vmul.f32 %v442_v22, %v800_v0  ;;  %v449_v26 = vstv %s966_s17  ;;  %s990_s22 = sld [smem:[#allocation3 + $0x89]] }
  0x6f   :  { %v438_v29 = vrot.slane %v436_v21, 1  ;;  %v450_v30 = vmul.f32 %v449_v26, %v800_v0  ;;  %s993_s23 = sld [smem:[#allocation3 + $0x109]]  ;;  %v456_v34 = vstv %s969_s0  ;;  %v415_v42 = vadd.f32 %v413_v28, %v408_v27 }
  0x70   :  { %v445_v33 = vrot.slane %v443_v25, 2  ;;  %s997_s24 = sld [smem:[#allocation3 + $0x189]]  ;;  %v457_v37 = vmul.f32 %v456_v34, %v800_v0  ;;  %v463_v38 = vstv %s972_s18  ;;  %v381_v26 = vadd.f32 %v380_v8, %v335_v7 }
  0x71   :  { %v440_v35 = vadd.f32 %v438_v29, %v433_v24  ;;  %v452_v36 = vrot.slane %v450_v30, 3  ;;  %s1001_s4 = sld [smem:[#allocation3 + $0x209]]  ;;  %v464_v47 = vmul.f32 %v463_v38, %v800_v0  ;;  %v422_v59 = vadd.f32 %v420_v41, %v415_v42 }
  0x72   :  { %s1003_s25 = sld [smem:[#allocation3 + $0x289]]  ;;  %v475_v44 = vstv %s981_s20  ;;  %v459_v51 = vrot.slane %v457_v37, 4  ;;  %v425_v15 = vstv %s975_s19 }
  0x73   :  { %v447_v43 = vadd.f32 %v445_v33, %v440_v35  ;;  %s1005_s26 = sld [smem:[#allocation7 + $0x8]]  ;;  %v477_v45 = vstv %s985_s21  ;;  %v466_v62 = vrot.slane %v464_v47, 5  ;;  %v424_v14 = vmax.f32 %v422_v59, 0.0 }
  0x74   :  { %v478_v48 = vmul.f32 %v477_v45, %v800_v0  ;;  %v481_v49 = vstv %s990_s22  ;;  %s1012_s2 = sld [smem:[#allocation5 + $0xa]] }
  0x75   :  { %v454_v50 = vadd.f32 %v452_v36, %v447_v43  ;;  %v482_v52 = vmul.f32 %v481_v49, %v800_v0  ;;  %v488_v53 = vstv %s993_s23  ;;  %s1016_s1 = sld [smem:[#allocation3 + $0xa]]  ;;  %v426_v30 = vmul.f32 %v425_v15, %v424_v14 }
  0x76   :  { %v479_v55 = vadd.f32 %v478_v48, %v475_v44  ;;  %v489_v56 = vmul.f32 %v488_v53, %v800_v0  ;;  %v495_v57 = vstv %s997_s24  ;;  %s1020_s27 = sld [smem:[#allocation3 + $0x8a]] }
  0x77   :  { %v484_v60 = vrot.slane %v482_v52, 1  ;;  %v496_v61 = vmul.f32 %v495_v57, %v800_v0  ;;  %s1024_s28 = sld [smem:[#allocation3 + $0x10a]]  ;;  %v502_v1 = vstv %s1001_s4  ;;  %v461_v3 = vadd.f32 %v459_v51, %v454_v50 }
  0x78   :  { %v491_v63 = vrot.slane %v489_v56, 2  ;;  %v509_v2 = vstv %s1003_s25  ;;  %s1028_s29 = sld [smem:[#allocation3 + $0x18a]]  ;;  %v503_v6 = vmul.f32 %v502_v1, %v800_v0  ;;  %v427_v45 = vadd.f32 %v426_v30, %v381_v26 }
  0x79   :  { %v486_v4 = vadd.f32 %v484_v60, %v479_v55  ;;  %v498_v5 = vrot.slane %v496_v61, 3  ;;  %s1031_s30 = sld [smem:[#allocation3 + $0x20a]]  ;;  %v510_v9 = vmul.f32 %v509_v2, %v800_v0  ;;  %v468_v18 = vadd.f32 %v466_v62, %v461_v3 }
  0x7a   :  { %s1034_s6 = sld [smem:[#allocation3 + $0x28a]]  ;;  %v505_v11 = vrot.slane %v503_v6, 4  ;;  %v521_v12 = vstv %s1012_s2  ;;  %v471_v38 = vstv %s1005_s26 }
  0x7b   :  { %v493_v10 = vadd.f32 %v491_v63, %v486_v4  ;;  %s1036_s7 = sld [smem:[#allocation7 + $0x9]]  ;;  %v523_v13 = vstv %s1016_s1  ;;  %v512_v22 = vrot.slane %v510_v9, 5  ;;  %v470_v37 = vmax.f32 %v468_v18, 0.0 }
  0x7c   :  { %v524_v16 = vmul.f32 %v523_v13, %v800_v0  ;;  %v527_v17 = vstv %s1020_s27  ;;  %s1043_s8 = sld [smem:[#allocation5 + $0xb]] }
  0x7d   :  { %v500_v19 = vadd.f32 %v498_v5, %v493_v10  ;;  %v528_v20 = vmul.f32 %v527_v17, %v800_v0  ;;  %v534_v21 = vstv %s1024_s28  ;;  %s1047_s9 = sld [smem:[#allocation3 + $0xb]]  ;;  %v472_v52 = vmul.f32 %v471_v38, %v470_v37 }
  0x7e   :  { %v525_v23 = vadd.f32 %v524_v16, %v521_v12  ;;  %v535_v24 = vmul.f32 %v534_v21, %v800_v0  ;;  %v541_v25 = vstv %s1028_s29  ;;  %s706_s3 = sld [smem:[#allocation3 + $0x8b]] }
  0x7f   :  { %v507_v27 = vadd.f32 %v505_v11, %v500_v19  ;;  %v530_v28 = vrot.slane %v528_v20, 1  ;;  %v542_v29 = vmul.f32 %v541_v25, %v800_v0  ;;  %s707_s10 = sld [smem:[#allocation3 + $0x10b]]  ;;  %v548_v32 = vstv %s1031_s30 }
  0x80   :  { %v537_v31 = vrot.slane %v535_v24, 2  ;;  %v555_v33 = vstv %s1034_s6  ;;  %s708_s11 = sld [smem:[#allocation3 + $0x18b]]  ;;  %v549_v36 = vmul.f32 %v548_v32, %v800_v0  ;;  %v473_v5 = vadd.f32 %v472_v52, %v427_v45 }
  0x81   :  { %v532_v34 = vadd.f32 %v530_v28, %v525_v23  ;;  %v544_v35 = vrot.slane %v542_v29, 3  ;;  %s1055_s12 = sld [smem:[#allocation3 + $0x20b]]  ;;  %v514_v39 = vadd.f32 %v512_v22, %v507_v27  ;;  %v556_v40 = vmul.f32 %v555_v33, %v800_v0 }
  0x82   :  { %s710_s13 = sld [smem:[#allocation3 + $0x28b]]  ;;  %v551_v42 = vrot.slane %v549_v36, 4  ;;  %v567_v43 = vstv %s1043_s8  ;;  %v517_v60 = vstv %s1036_s7 }
  0x83   :  { %v539_v41 = vadd.f32 %v537_v31, %v532_v34  ;;  %v569_v44 = vstv %s1047_s9  ;;  %s1061_s14 = sld [smem:[#allocation7 + $0xa]]  ;;  %v558_v49 = vrot.slane %v556_v40, 5  ;;  %v516_v56 = vmax.f32 %v514_v39, 0.0 }
  0x84   :  { %v570_v46 = vmul.f32 %v569_v44, %v800_v0  ;;  %v573_v47 = vstv %s706_s3  ;;  %s711_s15 = sld [smem:[#allocation7 + $0xb]] }
  0x85   :  { %v546_v48 = vadd.f32 %v544_v35, %v539_v41  ;;  %v574_v50 = vmul.f32 %v573_v47, %v800_v0  ;;  %v580_v51 = vstv %s707_s10  ;;  %v518_v7 = vmul.f32 %v517_v60, %v516_v56 }
  0x86   :  { %v571_v53 = vadd.f32 %v570_v46, %v567_v43  ;;  %v581_v54 = vmul.f32 %v580_v51, %v800_v0  ;;  %v587_v55 = vstv %s708_s11 }
  0x87   :  { %v553_v57 = vadd.f32 %v551_v42, %v546_v48  ;;  %v576_v58 = vrot.slane %v574_v50, 1  ;;  %v588_v59 = vmul.f32 %v587_v55, %v800_v0  ;;  %v594_v62 = vstv %s1055_s12 }
  0x88   :  { %v583_v61 = vrot.slane %v581_v54, 2  ;;  %v601_v63 = vstv %s710_s13  ;;  %v595_v4 = vmul.f32 %v594_v62, %v800_v0  ;;  %v519_v14 = vadd.f32 %v518_v7, %v473_v5 }
  0x89   :  { %v560_v1 = vadd.f32 %v558_v49, %v553_v57  ;;  %v578_v2 = vadd.f32 %v576_v58, %v571_v53  ;;  %v590_v3 = vrot.slane %v588_v59, 3  ;;  %v602_v6 = vmul.f32 %v601_v63, %v800_v0 }
  0x8a   :  { %v597_v10 = vrot.slane %v595_v4, 4  ;;  %v563_v11 = vstv %s1061_s14  ;;  %v609_v18 = vstv %s711_s15 }
  0x8b   :  { %v562_v8 = vmax.f32 %v560_v1, 0.0  ;;  %v585_v9 = vadd.f32 %v583_v61, %v578_v2  ;;  %v604_v13 = vrot.slane %v602_v6, 5 }
  0x8d   :  { %v592_v12 = vadd.f32 %v590_v3, %v585_v9  ;;  %v564_v15 = vmul.f32 %v563_v11, %v562_v8 }
  0x8f   :  { %v599_v16 = vadd.f32 %v597_v10, %v592_v12  ;;  %v565_v19 = vadd.f32 %v564_v15, %v519_v14 }
  0x91   :  { %v606_v17 = vadd.f32 %v604_v13, %v599_v16 }
  0x93   :  { %v608_v20 = vmax.f32 %v606_v17, 0.0 }
  0x95   :  { %v610_v21 = vmul.f32 %v609_v18, %v608_v20 }
  0x97   :  { %v611_v22 = vadd.f32 %v610_v21, %v565_v19 }
  0x99   :  { %612 = vst [vmem:[%s1080_s5] sm:$0x1] %v611_v22 }
  0x9a   :  { %617 = vsyncpa [#allocation4], 1 }
  0x9b   :  { %618 = vsyncpa [#allocation6], 1 }

</bundles_post_ra>
